<compile_context>
chip_gen: v5e
topology: v5e:2x2
jax: 0.10.0
libtpu: 0.0.40
codegen_flags: <defaults>
</compile_context>

<pallas_src>
import functools

import jax
import jax.numpy as jnp
import numpy as np
from jax import lax
from jax.experimental import pallas as pl
from jax.experimental.pallas import tpu as pltpu


# ----------------------- Pallas kernel A: recurrence --------------------------
def _gru_recurrence_kernel(seq_len, batch, num_layers, hidden,
                           emb_ref, h0_ref, *rest):
    """rest = [W_rzh, U_rz, b_rz, Uh, bh] * num_layers + [top_ref, hfin_ref, x0g_ref]."""
    n_w = num_layers * 5
    w_refs = rest[:n_w]
    top_ref = rest[n_w]          # (S*B, H) f32 output slab: top-layer h per timestep
    hfin_ref = rest[n_w + 1]     # (L, B, H) f32 final hidden state
    x0g_ref = rest[n_w + 2]      # (S*B, 3H) f32 scratch: layer-0 x-side gates

    f32 = jnp.float32
    bf16 = jnp.bfloat16
    H = hidden

    # Load the (small) packed weights once.  Biases stay (1, ...) and broadcast
    # only at the point of the add.
    layer_w = []
    for l in range(num_layers):
        W_rzh, U_rz, b_rz, Uh, bh = (r[...] for r in w_refs[l * 5:(l + 1) * 5])
        layer_w.append((W_rzh, U_rz, b_rz, Uh, bh))

    # Prologue: layer-0 input-side gate projection for ALL timesteps in one MXU
    # op (bf16 operands, f32 accumulate), written to a VMEM scratch slab that is
    # sliced per step inside the loop.
    x0g_ref[...] = jnp.dot(emb_ref[...], layer_w[0][0], preferred_element_type=f32)

    def cell(l, xg, h):
        # One GRU cell update given precomputed x-side gates xg=(B,3H), h=(B,H).
        # NOTE: with H=32 the gate slices land mid-vreg; at production sizes
        # choose H as a multiple of 128 so these become free .at views.
        _, U_rz, b_rz, Uh, bh = layer_w[l]
        hg = jnp.dot(h.astype(bf16), U_rz, preferred_element_type=f32) + b_rz
        rz = jax.nn.sigmoid(xg[:, :2 * H] + hg)
        r, z = rz[:, :H], rz[:, H:]
        th = jnp.tanh(xg[:, 2 * H:]
                      + jnp.dot((r * h).astype(bf16), Uh, preferred_element_type=f32)
                      + bh)
        return (1.0 - z) * h + z * th

    # Wavefront-interleaved recurrence over a fori_loop: iteration i runs layer l
    # at timestep i-l (pipeline fill/drain steps are masked with jnp.where; the
    # masked results never feed a live value).
    hs0 = tuple(h0_ref[l].astype(f32) for l in range(num_layers))
    xpipe0 = tuple(jnp.zeros((batch, H), f32) for _ in range(num_layers - 1))
    n_steps = seq_len + num_layers - 1

    def body(i, carry):
        hs, xpipe = carry
        hs = list(hs)
        new_xpipe = [None] * (num_layers - 1)

        # Layer 0 @ t = i  (clamp the slab read; result masked when i >= S).
        t0 = jnp.minimum(i, seq_len - 1)
        off0 = pl.multiple_of(t0 * batch, batch)
        xg0 = x0g_ref[pl.ds(off0, batch), :]
        h_new = cell(0, xg0, hs[0])
        hs[0] = jnp.where(i < seq_len, h_new, hs[0])
        out_prev = h_new

        # Layers 1..L-1 @ t = i - l, fed by the previous iteration's layer l-1
        # output (xpipe).  Independent of layer 0 above within this iteration.
        for l in range(1, num_layers):
            xg = jnp.dot(xpipe[l - 1].astype(bf16), layer_w[l][0],
                         preferred_element_type=f32)
            h_new = cell(l, xg, hs[l])
            active = jnp.logical_and(i - l >= 0, i - l < seq_len)
            hs[l] = jnp.where(active, h_new, hs[l])
            new_xpipe[l - 1] = out_prev
            out_prev = h_new

        # Store the top layer's state for timestep i-(L-1) straight into the slab.
        @pl.when(i >= num_layers - 1)
        def _():
            off = pl.multiple_of((i - (num_layers - 1)) * batch, batch)
            top_ref[pl.ds(off, batch), :] = out_prev.astype(top_ref.dtype)

        return (tuple(hs), tuple(new_xpipe))

    hs_fin, _ = lax.fori_loop(0, n_steps, body, (hs0, xpipe0))

    for l in range(num_layers):
        hfin_ref[l] = hs_fin[l].astype(hfin_ref.dtype)


# ------------------- Pallas kernel B: output projection ------------------------
def _out_proj_kernel(top_ref, w_ref, b_ref, out_ref):
    # (TM, H) @ (H, TN) + (1, TN) -> lane-dense (TM, TN) f32 store.
    out_ref[...] = (jnp.dot(top_ref[...].astype(jnp.bfloat16), w_ref[...],
                            preferred_element_type=jnp.float32)
                    + b_ref[...]).astype(out_ref.dtype)


# ------------------------------ JAX wrapper ------------------------------------
def gru_forward(inputs, hidden, params):
    """inputs: (seq_len, batch) int32; hidden: (num_layers, batch, hidden) f32."""
    seq_len, batch = inputs.shape
    num_layers, _, hidden_size = hidden.shape
    vocab_size = params["Wout"].shape[1]
    vocab_p = ((vocab_size + 127) // 128) * 128   # lane-dense logits slab

    # Embedding lookup is glue (plain JAX gather), flattened for the prologue matmul.
    emb_flat = params["embeddings"][inputs].reshape(seq_len * batch, -1)
    emb_flat = emb_flat.astype(jnp.bfloat16)

    # Pack weights: x-side gates fused (r|z|h), h-side (r|z) fused, Uh separate.
    # MXU operands in bf16; biases stay f32 (added on the VPU in f32).
    weight_args = []
    for l in range(num_layers):
        lp = params["layers"][l]
        weight_args += [
            jnp.concatenate([lp["Wr"], lp["Wz"], lp["Wh"]], axis=1).astype(jnp.bfloat16),
            jnp.concatenate([lp["Ur"], lp["Uz"]], axis=1).astype(jnp.bfloat16),
            jnp.concatenate([lp["br"], lp["bz"]], axis=1),                   # (1, 2H) f32
            lp["Uh"].astype(jnp.bfloat16),
            lp["bh"],                                                        # (1, H)  f32
        ]

    n_in = 2 + len(weight_args)
    kernel_a = functools.partial(_gru_recurrence_kernel,
                                 seq_len, batch, num_layers, hidden_size)
    top_states, h_final = pl.pallas_call(
        kernel_a,
        out_shape=(
            jax.ShapeDtypeStruct((seq_len * batch, hidden_size), jnp.float32),
            jax.ShapeDtypeStruct((num_layers, batch, hidden_size), jnp.float32),
        ),
        in_specs=[pl.BlockSpec(memory_space=pltpu.MemorySpace.VMEM)] * n_in,
        out_specs=(pl.BlockSpec(memory_space=pltpu.MemorySpace.VMEM),
                   pl.BlockSpec(memory_space=pltpu.MemorySpace.VMEM)),
        scratch_shapes=[pltpu.VMEM((seq_len * batch, 3 * hidden_size), jnp.float32)],
        compiler_params=pltpu.CompilerParams(vmem_limit_bytes=32 * 1024 * 1024),
    )(emb_flat, hidden, *weight_args)

    # Deferred output projection: gridded over (row tiles, vocab tiles), both axes
    # parallel (v7x megacore); Wout/logits tiles are pipelined by BlockSpec instead
    # of being held fully VMEM-resident.  Vocab padded to a 128 multiple for
    # unmasked lane-dense stores; padding is sliced off in the wrapper.
    Wout_p = jnp.pad(params["Wout"].astype(jnp.bfloat16),
                     ((0, 0), (0, vocab_p - vocab_size)))
    bout_p = jnp.pad(params["bout"], ((0, 0), (0, vocab_p - vocab_size)))

    rows = seq_len * batch
    tm = rows if rows <= 256 else next(t for t in (256, 128, 64, 32, 16, 8)
                                       if rows % t == 0)
    tn = next(t for t in (512, 256, 128) if vocab_p % t == 0)

    logits_p = pl.pallas_call(
        _out_proj_kernel,
        out_shape=jax.ShapeDtypeStruct((rows, vocab_p), jnp.float32),
        grid=(rows // tm, vocab_p // tn),
        in_specs=[
            pl.BlockSpec((tm, hidden_size), lambda i, j: (i, 0)),
            pl.BlockSpec((hidden_size, tn), lambda i, j: (0, j)),
            pl.BlockSpec((1, tn), lambda i, j: (0, j)),
        ],
        out_specs=pl.BlockSpec((tm, tn), lambda i, j: (i, j)),
        compiler_params=pltpu.CompilerParams(
            dimension_semantics=("parallel", "parallel"),
            vmem_limit_bytes=32 * 1024 * 1024),
    )(top_states, Wout_p, bout_p)

    logits = logits_p[:, :vocab_size].reshape(seq_len, batch, vocab_size)
    return logits, h_final


# --------------------------- pure-JAX reference -------------------------------
def gru_reference(inputs, hidden, params):
    emb = params["embeddings"][inputs]
    h = hidden
    logits = []
    for t in range(inputs.shape[0]):
        x = emb[t]
        new_h = []
        for layer in range(h.shape[0]):
            p = params["layers"][layer]
            hl = h[layer]
            r = jax.nn.sigmoid(x @ p["Wr"] + hl @ p["Ur"] + p["br"])
            z = jax.nn.sigmoid(x @ p["Wz"] + hl @ p["Uz"] + p["bz"])
            th = jnp.tanh(x @ p["Wh"] + (r * hl) @ p["Uh"] + p["bh"])
            hl = (1.0 - z) * hl + z * th
            new_h.append(hl)
            x = hl
        h = jnp.stack(new_h)
        logits.append(x @ params["Wout"] + params["bout"])
    return jnp.stack(logits), h


# ----------------------- deterministic parameter init -------------------------
def init_params(key, emb_size, hidden_size, vocab_size, num_layers):
    k = float(np.sqrt(1.0 / hidden_size))
    keys = jax.random.split(key, 2 + num_layers)

    params = {
        "embeddings": jax.random.uniform(keys[0], (vocab_size, emb_size),
                                         jnp.float32, -0.1, 0.1),
        "Wout": jax.random.uniform(keys[1], (hidden_size, vocab_size),
                                   jnp.float32, -0.1, 0.1),
        "bout": jnp.zeros((1, vocab_size), jnp.float32),
        "layers": [],
    }
    for layer in range(num_layers):
        in_dim = emb_size if layer == 0 else hidden_size
        lkeys = jax.random.split(keys[2 + layer], 9)
        u = lambda kk, shape: jax.random.uniform(kk, shape, jnp.float32, -k, k)
        params["layers"].append({
            "Wr": u(lkeys[0], (in_dim, hidden_size)),
            "Ur": u(lkeys[1], (hidden_size, hidden_size)),
            "br": u(lkeys[2], (1, hidden_size)),
            "Wz": u(lkeys[3], (in_dim, hidden_size)),
            "Uz": u(lkeys[4], (hidden_size, hidden_size)),
            "bz": u(lkeys[5], (1, hidden_size)),
            "Wh": u(lkeys[6], (in_dim, hidden_size)),
            "Uh": u(lkeys[7], (hidden_size, hidden_size)),
            "bh": u(lkeys[8], (1, hidden_size)),
        })
    return params


# ----------------------------------- main --------------------------------------
if __name__ == "__main__":
    emb_size = 32
    hidden_size = 32
    seq_len = 8
    batch_size = 8
    vocab_size = 64
    num_layers = 2
    # dp_keep_prob = 1.0  -> dropout is identity (see TODO above)

    root = jax.random.PRNGKey(0)
    k_param, k_tok = jax.random.split(root)
    params = init_params(k_param, emb_size, hidden_size, vocab_size, num_layers)

    inputs = jax.random.randint(k_tok, (seq_len, batch_size), 0, vocab_size, jnp.int32)
    hidden0 = jnp.zeros((num_layers, batch_size, hidden_size), jnp.float32)  # init_hidden()

    logits, h_final = gru_forward(inputs, hidden0, params)
    logits = jax.block_until_ready(logits)
    h_final = jax.block_until_ready(h_final)

    # Correctness check against the pure-f32 JAX reference.  Tolerance is 1e-2
    # because the kernel feeds the MXU bf16 operands (f32 accumulation); at
    # these magnitudes the observed error is a few 1e-3.
    ref_logits, ref_h = gru_reference(inputs, hidden0, params)
    np.testing.assert_allclose(np.asarray(logits), np.asarray(ref_logits),
                               rtol=1e-2, atol=1e-2)
    np.testing.assert_allclose(np.asarray(h_final), np.asarray(ref_h),
                               rtol=1e-2, atol=1e-2)

    assert logits.shape == (seq_len, batch_size, vocab_size)
    assert h_final.shape == (num_layers, batch_size, hidden_size)
    print("KERNEL_OK")
</pallas_src>

<mosaic_0001>
module attributes {stable_mosaic.version = 11 : i64} {
  func.func @_gru_recurrence_kernel(%arg0: memref<64x32xbf16, #tpu.memory_space<vmem>>, %arg1: memref<2x8x32xf32, #tpu.memory_space<vmem>>, %arg2: memref<32x96xbf16, #tpu.memory_space<vmem>>, %arg3: memref<32x64xbf16, #tpu.memory_space<vmem>>, %arg4: memref<1x64xf32, #tpu.memory_space<vmem>>, %arg5: memref<32x32xbf16, #tpu.memory_space<vmem>>, %arg6: memref<1x32xf32, #tpu.memory_space<vmem>>, %arg7: memref<32x96xbf16, #tpu.memory_space<vmem>>, %arg8: memref<32x64xbf16, #tpu.memory_space<vmem>>, %arg9: memref<1x64xf32, #tpu.memory_space<vmem>>, %arg10: memref<32x32xbf16, #tpu.memory_space<vmem>>, %arg11: memref<1x32xf32, #tpu.memory_space<vmem>>, %arg12: memref<64x32xf32, #tpu.memory_space<vmem>>, %arg13: memref<2x8x32xf32, #tpu.memory_space<vmem>>, %arg14: memref<64x96xf32, #tpu.memory_space<vmem>>) attributes {dimension_semantics = [], scalar_prefetch = 0 : i64, scratch_operands = 1 : i64, tpu.core_type = #tpu.core_type<tc>} {
    %c0 = arith.constant 0 : index
    %c0_0 = arith.constant 0 : index
    %0 = vector.load %arg2[%c0, %c0_0] : memref<32x96xbf16, #tpu.memory_space<vmem>>, vector<32x96xbf16>
    %c0_1 = arith.constant 0 : index
    %c0_2 = arith.constant 0 : index
    %1 = vector.load %arg3[%c0_1, %c0_2] : memref<32x64xbf16, #tpu.memory_space<vmem>>, vector<32x64xbf16>
    %c0_3 = arith.constant 0 : index
    %c0_4 = arith.constant 0 : index
    %2 = vector.load %arg4[%c0_3, %c0_4] : memref<1x64xf32, #tpu.memory_space<vmem>>, vector<1x64xf32>
    %c0_5 = arith.constant 0 : index
    %c0_6 = arith.constant 0 : index
    %3 = vector.load %arg5[%c0_5, %c0_6] : memref<32x32xbf16, #tpu.memory_space<vmem>>, vector<32x32xbf16>
    %c0_7 = arith.constant 0 : index
    %c0_8 = arith.constant 0 : index
    %4 = vector.load %arg6[%c0_7, %c0_8] : memref<1x32xf32, #tpu.memory_space<vmem>>, vector<1x32xf32>
    %c0_9 = arith.constant 0 : index
    %c0_10 = arith.constant 0 : index
    %5 = vector.load %arg7[%c0_9, %c0_10] : memref<32x96xbf16, #tpu.memory_space<vmem>>, vector<32x96xbf16>
    %c0_11 = arith.constant 0 : index
    %c0_12 = arith.constant 0 : index
    %6 = vector.load %arg8[%c0_11, %c0_12] : memref<32x64xbf16, #tpu.memory_space<vmem>>, vector<32x64xbf16>
    %c0_13 = arith.constant 0 : index
    %c0_14 = arith.constant 0 : index
    %7 = vector.load %arg9[%c0_13, %c0_14] : memref<1x64xf32, #tpu.memory_space<vmem>>, vector<1x64xf32>
    %c0_15 = arith.constant 0 : index
    %c0_16 = arith.constant 0 : index
    %8 = vector.load %arg10[%c0_15, %c0_16] : memref<32x32xbf16, #tpu.memory_space<vmem>>, vector<32x32xbf16>
    %c0_17 = arith.constant 0 : index
    %c0_18 = arith.constant 0 : index
    %9 = vector.load %arg11[%c0_17, %c0_18] : memref<1x32xf32, #tpu.memory_space<vmem>>, vector<1x32xf32>
    %c0_19 = arith.constant 0 : index
    %c0_20 = arith.constant 0 : index
    %10 = vector.load %arg0[%c0_19, %c0_20] : memref<64x32xbf16, #tpu.memory_space<vmem>>, vector<64x32xbf16>
    %cst = arith.constant dense<0.000000e+00> : vector<64x96xf32>
    %11 = tpu.matmul %10, %0, %cst {dimension_numbers = #tpu.dot_dimension_numbers<[1], [0], [0], [1], [0, 0, 1, 1], [], []>} : vector<64x32xbf16>, vector<32x96xbf16>, vector<64x96xf32> -> vector<64x96xf32>
    %c0_21 = arith.constant 0 : index
    %c0_22 = arith.constant 0 : index
    %12 = vector.load %arg14[%c0_21, %c0_22] : memref<64x96xf32, #tpu.memory_space<vmem>>, vector<64x96xf32>
    tpu.vector_store %arg14[%c0_21, %c0_22], %11 {strides = array<i32>} : memref<64x96xf32, #tpu.memory_space<vmem>>, vector<64x96xf32>,
    %c0_23 = arith.constant 0 : index
    %c0_24 = arith.constant 0 : index
    %c0_25 = arith.constant 0 : index
    %13 = vector.load %arg1[%c0_23, %c0_24, %c0_25] : memref<2x8x32xf32, #tpu.memory_space<vmem>>, vector<1x8x32xf32>
    %14 = vector.shape_cast %13 : vector<1x8x32xf32> to vector<8x32xf32>
    %c1 = arith.constant 1 : index
    %c0_26 = arith.constant 0 : index
    %c0_27 = arith.constant 0 : index
    %15 = vector.load %arg1[%c1, %c0_26, %c0_27] : memref<2x8x32xf32, #tpu.memory_space<vmem>>, vector<1x8x32xf32>
    %16 = vector.shape_cast %15 : vector<1x8x32xf32> to vector<8x32xf32>
    %cst_28 = arith.constant 0.000000e+00 : f32
    %17 = vector.broadcast %cst_28 : f32 to vector<8x32xf32>
    %c0_i32 = arith.constant 0 : i32
    %c9_i32 = arith.constant 9 : i32
    %18 = arith.addi %c0_i32, %c9_i32 : i32
    %c1_i32 = arith.constant 1 : i32
    %19:3 = scf.for %arg15 = %c0_i32 to %18 step %c1_i32 iter_args(%arg16 = %14, %arg17 = %16, %arg18 = %17) -> (vector<8x32xf32>, vector<8x32xf32>, vector<8x32xf32>)  : i32 {
      %c7_i32 = arith.constant 7 : i32
      %26 = arith.minsi %arg15, %c7_i32 : i32
      %c8_i32 = arith.constant 8 : i32
      %27 = arith.muli %26, %c8_i32 : i32
      %28 = tpu.assume_multiple %27, 8 : i32
      %29 = arith.index_cast %28 : i32 to index
      %c0_36 = arith.constant 0 : index
      %30 = vector.load %arg14[%29, %c0_36] : memref<64x96xf32, #tpu.memory_space<vmem>>, vector<8x96xf32>
      %31 = arith.truncf %arg16 : vector<8x32xf32> to vector<8x32xbf16>
      %cst_37 = arith.constant dense<0.000000e+00> : vector<8x64xf32>
      %32 = tpu.matmul %31, %1, %cst_37 {dimension_numbers = #tpu.dot_dimension_numbers<[1], [0], [0], [1], [0, 0, 1, 1], [], []>} : vector<8x32xbf16>, vector<32x64xbf16>, vector<8x64xf32> -> vector<8x64xf32>
      %33 = vector.broadcast %2 : vector<1x64xf32> to vector<8x64xf32>
      %34 = arith.addf %32, %33 : vector<8x64xf32>
      %35 = vector.extract_strided_slice %30 {offsets = [0, 0], sizes = [8, 64], strides = [1, 1]} : vector<8x96xf32> to vector<8x64xf32>
      %36 = arith.addf %35, %34 : vector<8x64xf32>
      %37 = arith.negf %36 : vector<8x64xf32>
      %38 = math.exp %37 : vector<8x64xf32>
      %cst_38 = arith.constant 1.000000e+00 : f32
      %39 = vector.broadcast %cst_38 : f32 to vector<8x64xf32>
      %40 = arith.addf %39, %38 : vector<8x64xf32>
      %41 = arith.divf %39, %40 : vector<8x64xf32>
      %42 = vector.extract_strided_slice %41 {offsets = [0, 0], sizes = [8, 32], strides = [1, 1]} : vector<8x64xf32> to vector<8x32xf32>
      %43 = vector.extract_strided_slice %41 {offsets = [0, 32], sizes = [8, 32], strides = [1, 1]} : vector<8x64xf32> to vector<8x32xf32>
      %44 = vector.extract_strided_slice %30 {offsets = [0, 64], sizes = [8, 32], strides = [1, 1]} : vector<8x96xf32> to vector<8x32xf32>
      %45 = arith.mulf %42, %arg16 : vector<8x32xf32>
      %46 = arith.truncf %45 : vector<8x32xf32> to vector<8x32xbf16>
      %cst_39 = arith.constant dense<0.000000e+00> : vector<8x32xf32>
      %47 = tpu.matmul %46, %3, %cst_39 {dimension_numbers = #tpu.dot_dimension_numbers<[1], [0], [0], [1], [0, 0, 1, 1], [], []>} : vector<8x32xbf16>, vector<32x32xbf16>, vector<8x32xf32> -> vector<8x32xf32>
      %48 = arith.addf %44, %47 : vector<8x32xf32>
      %49 = vector.broadcast %4 : vector<1x32xf32> to vector<8x32xf32>
      %50 = arith.addf %48, %49 : vector<8x32xf32>
      %51 = math.tanh %50 : vector<8x32xf32>
      %cst_40 = arith.constant 1.000000e+00 : f32
      %52 = vector.broadcast %cst_40 : f32 to vector<8x32xf32>
      %53 = arith.subf %52, %43 : vector<8x32xf32>
      %54 = arith.mulf %53, %arg16 : vector<8x32xf32>
      %55 = arith.mulf %43, %51 : vector<8x32xf32>
      %56 = arith.addf %54, %55 : vector<8x32xf32>
      %c8_i32_41 = arith.constant 8 : i32
      %57 = arith.cmpi slt, %arg15, %c8_i32_41 : i32
      %58 = arith.select %57, %56, %arg16 : vector<8x32xf32>
      %59 = arith.truncf %arg18 : vector<8x32xf32> to vector<8x32xbf16>
      %cst_42 = arith.constant dense<0.000000e+00> : vector<8x96xf32>
      %60 = tpu.matmul %59, %5, %cst_42 {dimension_numbers = #tpu.dot_dimension_numbers<[1], [0], [0], [1], [0, 0, 1, 1], [], []>} : vector<8x32xbf16>, vector<32x96xbf16>, vector<8x96xf32> -> vector<8x96xf32>
      %61 = arith.truncf %arg17 : vector<8x32xf32> to vector<8x32xbf16>
      %cst_43 = arith.constant dense<0.000000e+00> : vector<8x64xf32>
      %62 = tpu.matmul %61, %6, %cst_43 {dimension_numbers = #tpu.dot_dimension_numbers<[1], [0], [0], [1], [0, 0, 1, 1], [], []>} : vector<8x32xbf16>, vector<32x64xbf16>, vector<8x64xf32> -> vector<8x64xf32>
      %63 = vector.broadcast %7 : vector<1x64xf32> to vector<8x64xf32>
      %64 = arith.addf %62, %63 : vector<8x64xf32>
      %65 = vector.extract_strided_slice %60 {offsets = [0, 0], sizes = [8, 64], strides = [1, 1]} : vector<8x96xf32> to vector<8x64xf32>
      %66 = arith.addf %65, %64 : vector<8x64xf32>
      %67 = arith.negf %66 : vector<8x64xf32>
      %68 = math.exp %67 : vector<8x64xf32>
      %cst_44 = arith.constant 1.000000e+00 : f32
      %69 = vector.broadcast %cst_44 : f32 to vector<8x64xf32>
      %70 = arith.addf %69, %68 : vector<8x64xf32>
      %71 = arith.divf %69, %70 : vector<8x64xf32>
      %72 = vector.extract_strided_slice %71 {offsets = [0, 0], sizes = [8, 32], strides = [1, 1]} : vector<8x64xf32> to vector<8x32xf32>
      %73 = vector.extract_strided_slice %71 {offsets = [0, 32], sizes = [8, 32], strides = [1, 1]} : vector<8x64xf32> to vector<8x32xf32>
      %74 = vector.extract_strided_slice %60 {offsets = [0, 64], sizes = [8, 32], strides = [1, 1]} : vector<8x96xf32> to vector<8x32xf32>
      %75 = arith.mulf %72, %arg17 : vector<8x32xf32>
      %76 = arith.truncf %75 : vector<8x32xf32> to vector<8x32xbf16>
      %cst_45 = arith.constant dense<0.000000e+00> : vector<8x32xf32>
      %77 = tpu.matmul %76, %8, %cst_45 {dimension_numbers = #tpu.dot_dimension_numbers<[1], [0], [0], [1], [0, 0, 1, 1], [], []>} : vector<8x32xbf16>, vector<32x32xbf16>, vector<8x32xf32> -> vector<8x32xf32>
      %78 = arith.addf %74, %77 : vector<8x32xf32>
      %79 = vector.broadcast %9 : vector<1x32xf32> to vector<8x32xf32>
      %80 = arith.addf %78, %79 : vector<8x32xf32>
      %81 = math.tanh %80 : vector<8x32xf32>
      %cst_46 = arith.constant 1.000000e+00 : f32
      %82 = vector.broadcast %cst_46 : f32 to vector<8x32xf32>
      %83 = arith.subf %82, %73 : vector<8x32xf32>
      %84 = arith.mulf %83, %arg17 : vector<8x32xf32>
      %85 = arith.mulf %73, %81 : vector<8x32xf32>
      %86 = arith.addf %84, %85 : vector<8x32xf32>
      %c1_i32_47 = arith.constant 1 : i32
      %87 = arith.subi %arg15, %c1_i32_47 : i32
      %c0_i32_48 = arith.constant 0 : i32
      %88 = arith.cmpi sge, %87, %c0_i32_48 : i32
      %c1_i32_49 = arith.constant 1 : i32
      %89 = arith.subi %arg15, %c1_i32_49 : i32
      %c8_i32_50 = arith.constant 8 : i32
      %90 = arith.cmpi slt, %89, %c8_i32_50 : i32
      %91 = arith.andi %88, %90 : i1
      %92 = arith.select %91, %86, %arg17 : vector<8x32xf32>
      %c1_i32_51 = arith.constant 1 : i32
      %93 = arith.cmpi sge, %arg15, %c1_i32_51 : i32
      %94 = arith.extui %93 : i1 to i32
      %c0_i32_52 = arith.constant 0 : i32
      %95 = arith.cmpi ne, %94, %c0_i32_52 : i32
      scf.if %95 {
        %c1_i32_53 = arith.constant 1 : i32
        %96 = arith.subi %arg15, %c1_i32_53 : i32
        %c8_i32_54 = arith.constant 8 : i32
        %97 = arith.muli %96, %c8_i32_54 : i32
        %98 = tpu.assume_multiple %97, 8 : i32
        %99 = arith.index_cast %98 : i32 to index
        %c0_55 = arith.constant 0 : index
        %100 = vector.load %arg12[%99, %c0_55] : memref<64x32xf32, #tpu.memory_space<vmem>>, vector<8x32xf32>
        tpu.vector_store %arg12[%99, %c0_55], %86 {strides = array<i32>} : memref<64x32xf32, #tpu.memory_space<vmem>>, vector<8x32xf32>,
      } else {
      }
      scf.yield %58, %92, %56 : vector<8x32xf32>, vector<8x32xf32>, vector<8x32xf32>
    }
    %c9_i32_29 = arith.constant 9 : i32
    %c0_30 = arith.constant 0 : index
    %c0_31 = arith.constant 0 : index
    %c0_32 = arith.constant 0 : index
    %20 = vector.load %arg13[%c0_30, %c0_31, %c0_32] : memref<2x8x32xf32, #tpu.memory_space<vmem>>, vector<1x8x32xf32>
    %21 = vector.shape_cast %20 : vector<1x8x32xf32> to vector<8x32xf32>
    %22 = vector.shape_cast %19#0 : vector<8x32xf32> to vector<1x8x32xf32>
    tpu.vector_store %arg13[%c0_30, %c0_31, %c0_32], %22 {strides = array<i32>} : memref<2x8x32xf32, #tpu.memory_space<vmem>>, vector<1x8x32xf32>,
    %c1_33 = arith.constant 1 : index
    %c0_34 = arith.constant 0 : index
    %c0_35 = arith.constant 0 : index
    %23 = vector.load %arg13[%c1_33, %c0_34, %c0_35] : memref<2x8x32xf32, #tpu.memory_space<vmem>>, vector<1x8x32xf32>
    %24 = vector.shape_cast %23 : vector<1x8x32xf32> to vector<8x32xf32>
    %25 = vector.shape_cast %19#1 : vector<8x32xf32> to vector<1x8x32xf32>
    tpu.vector_store %arg13[%c1_33, %c0_34, %c0_35], %25 {strides = array<i32>} : memref<2x8x32xf32, #tpu.memory_space<vmem>>, vector<1x8x32xf32>,
    return
  }
}

</mosaic_0001>

<bundles_post_ra>
// kernel: tpu_custom_call.1
= control target key start
LH: loop header
LB: loop body
LE: loop exit
PB: predicated region body
PF: predicated region fallthrough
CT: control target
= control target key end

     0   :  { %19 = vsyncpa [#allocation4], 0  ;;  %s1193_s0 = inlined_call_operand.vmem [shape: bf16[64,32], index: 0, kind: input, shape index: {}]   ;;  %s1194_s1 = inlined_call_operand.vmem [shape: f32[2,8,32], index: 1, kind: input, shape index: {}]   ;;  %s1195_s2 = inlined_call_operand.vmem [shape: bf16[32,96], index: 2, kind: input, shape index: {}]   ;;  %s1196_s3 = inlined_call_operand.vmem [shape: bf16[32,64], index: 3, kind: input, shape index: {}]   ;;  %s1197_s4 = inlined_call_operand.vmem [shape: f32[1,64], index: 4, kind: input, shape index: {}]   ;;  %s1198_s5 = inlined_call_operand.hbm [shape: bf16[32,32], index: 5, kind: input, shape index: {}]   ;;  %s1199_s6 = inlined_call_operand.vmem [shape: f32[1,32], index: 6, kind: input, shape index: {}]   ;;  %s1200_s7 = inlined_call_operand.hbm [shape: bf16[32,96], index: 7, kind: input, shape index: {}]   ;;  %s1201_s8 = inlined_call_operand.hbm [shape: bf16[32,64], index: 8, kind: input, shape index: {}]   ;;  %s1202_s9 = inlined_call_operand.vmem [shape: f32[1,64], index: 9, kind: input, shape index: {}]   ;;  %s1203_s10 = inlined_call_operand.hbm [shape: bf16[32,32], index: 10, kind: input, shape index: {}]   ;;  %s1204_s11 = inlined_call_operand.vmem [shape: f32[1,32], index: 11, kind: input, shape index: {}]   ;;  %s1205_s12 = inlined_call_operand.vmem [shape: f32[64,32], index: 12, kind: output, shape index: {0}]   ;;  %s1206_s13 = inlined_call_operand.hbm [shape: f32[2,8,32], index: 13, kind: output, shape index: {1}]  }
   0x1   :  { %20 = vsyncpa [#allocation7], 0 }
   0x2   :  { %21 = vsyncpa [#allocation10], 0 }
   0x3   :  { %22 = vsyncpa [#allocation5], 0  ;;  %s52_s27 = sshll.u32 %s1200_s7, 4  ;;  %s887_s28 = smov [#allocation6]   ;;  %s53_s27 = int_to_ptr.hbm [resolvable:$true] %s52_s27 }
   0x4   :  { %s54_s29 = sshll.u32 %s887_s28, 4  ;;  %s37_s15 = sshll.u32 %s1198_s5, 4  ;;  %s55_s29 = int_to_ptr.vmem [resolvable:$true] %s54_s29  ;;  %s38_s15 = int_to_ptr.hbm [resolvable:$true] %s37_s15 }
   0x5   :  { %s888_s16 = smov 64   ;;  %s889_s17 = smov 4  }
   0x6   :  { %60 = dma.hbm_to_vmem [thread:$0]  %s53_s27, 256, %s55_s29, [#allocation7], %s888_s16, %s888_s16, %s889_s17  }
   0x7   :  { %s890_s18 = smov [#allocation3]   ;;  %s65_s22 = sshll.u32 %s1201_s8, 4  ;;  %s66_s22 = int_to_ptr.hbm [resolvable:$true] %s65_s22 }
   0x8   :  { %s39_s19 = sshll.u32 %s890_s18, 4  ;;  %s80_s24 = sshll.u32 %s1203_s10, 4  ;;  %s40_s19 = int_to_ptr.vmem [resolvable:$true] %s39_s19  ;;  %s81_s24 = int_to_ptr.hbm [resolvable:$true] %s80_s24 }
   0x9   :  { %45 = dma.hbm_to_vmem [thread:$0]  %s38_s15, 256, %s40_s19, [#allocation4], %s888_s16, %s888_s16, %s889_s17  }
   0xa   :  { %s891_s25 = smov [#allocation8]   ;;  %s892_s5 = smov [#allocation9]  }
   0xb   :  { %s67_s26 = sshll.u32 %s891_s25, 4  ;;  %s82_s27 = sshll.u32 %s892_s5, 4  ;;  %s68_s26 = int_to_ptr.vmem [resolvable:$true] %s67_s26  ;;  %s83_s27 = int_to_ptr.vmem [resolvable:$true] %s82_s27 }
   0xc   :  { %73 = dma.hbm_to_vmem [thread:$0]  %s66_s22, 256, %s68_s26, [#allocation7], %s888_s16, %s888_s16, %s889_s17  }
   0xd   :  { %88 = dma.hbm_to_vmem [thread:$0]  %s81_s24, 256, %s83_s27, [#allocation10], %s888_s16, %s888_s16, %s889_s17  }
   0xe   :  { %863 = dma.done.wait [#allocation4], 256  }
   0xf   :  { %864 = vsyncadd [#allocation4], 4294967040 }
  0x10   :  { %865 = dma.done.wait [#allocation7], 512  }
  0x11   :  { %866 = vsyncadd [#allocation7], 4294966784 }
  0x12   :  { %867 = dma.done.wait [#allocation10], 256  }
  0x13   :  { %868 = vsyncadd [#allocation10], 4294967040  ;;  %v985_v0 = vld [vmem:[%s1196_s3] sm:$0xf]  ;;  %v990_v1 = vld [vmem:[%s1196_s3] sm:$0xf0] }
  0x14   :  { %v995_v2 = vld [vmem:[%s1196_s3 + $0x8] sm:$0xf]  ;;  %v1000_v3 = vld [vmem:[%s1196_s3 + $0x8] sm:$0xf0]  ;;  %v1005_v4 = vld [vmem:[%s1197_s4] sm:$0x1] }
  0x15   :  { %v1007_v5 = vld [vmem:[#allocation3] sm:$0xf]  ;;  %v1009_v6 = vld [vmem:[#allocation3] sm:$0xf0]  ;;  %v1011_v7 = vld [vmem:[#allocation3 + $0x8] sm:$0xf] }
  0x16   :  { %v1013_v8 = vld [vmem:[#allocation3 + $0x8] sm:$0xf0]  ;;  %v1018_v9 = vld [vmem:[%s1199_s6] sm:$0x1]  ;;  %v1020_v10 = vld [vmem:[#allocation6] sm:$0xf] }
  0x17   :  { %v1022_v11 = vld [vmem:[#allocation6] sm:$0xf0]  ;;  %v1024_v12 = vld [vmem:[#allocation6 + $0x8] sm:$0xf]  ;;  %v1026_v13 = vld [vmem:[#allocation6 + $0x8] sm:$0xf0] }
  0x18   :  { %v1028_v14 = vld [vmem:[#allocation8] sm:$0xf]  ;;  %v1030_v15 = vld [vmem:[#allocation8] sm:$0xf0]  ;;  %v1032_v16 = vld [vmem:[#allocation8 + $0x8] sm:$0xf] }
  0x19   :  { %v1034_v17 = vld [vmem:[#allocation8 + $0x8] sm:$0xf0]  ;;  %v1039_v18 = vld [vmem:[%s1202_s9] sm:$0x1]  ;;  %v1041_v19 = vld [vmem:[#allocation9] sm:$0xf] }
  0x1a   :  { %v1043_v20 = vld [vmem:[#allocation9] sm:$0xf0]  ;;  %v1045_v21 = vld [vmem:[#allocation9 + $0x8] sm:$0xf]  ;;  %v1047_v22 = vld [vmem:[#allocation9 + $0x8] sm:$0xf0] }
  0x1b   :  { %v1052_v23 = vld [vmem:[%s1204_s11] sm:$0x1]  ;;  %v595_v25 = vld [vmem:[%s1194_s1 + $0x8] sm:$0xff]   ;;  %vm176_vm0 = vcmask 261120   ;;  %v662_v30 = vld [vmem:[%s1193_s0 + $0x10] sm:$0xff]  ;;  %vm218_vm1 = vcmask 785408  }
  0x1c   :  { %v227_v24 = vld [vmem:[%s1194_s1] sm:$0xff]   ;;  %v649_v26 = vld [vmem:[%s1195_s2 + $0x8] sm:$0xff]  ;;  %v663_v31 = vld [vmem:[%s1193_s0 + $0x18] sm:$0xff]  ;;  %v1090_v40 = vmov 0.0  }
  0x1d   :  { %195 = vmatpush.bf16.msra.mxu0 %v649_v26  ;;  %664 = vmatpush.bf16.msra.mxu1 %v649_v26  ;;  %v648_v27 = vld [vmem:[%s1195_s2] sm:$0xff]  ;;  %v661_v29 = vld [vmem:[%s1193_s0 + $0x8] sm:$0xff] }
  0x1e   :  { %665 = vmatpush.bf16.msra.mxu2 %v649_v26  ;;  %666 = vmatpush.bf16.msra.mxu3 %v649_v26  ;;  %v660_v28 = vld [vmem:[%s1193_s0] sm:$0xff]  ;;  %s1096_s0 = smov 0  }
  0x21   :  { %196 = vmatpush.bf16.msra.mxu0 %v648_v27  ;;  %667 = vmatpush.bf16.msra.mxu1 %v648_v27 }
  0x22   :  { %668 = vmatpush.bf16.msra.mxu2 %v648_v27  ;;  %669 = vmatpush.bf16.msra.mxu3 %v648_v27 }
  0x24   :  { %591 = vmatmul.msk.bf16.vlgmr.msra.gmra.mxu0 %vm176_vm0, %v660_v28  ;;  %592 = vmatmul.msk.bf16.vlgmr.msra.gmra.mxu1 %vm176_vm0, %v661_v29 }
  0x25   :  { %593 = vmatmul.msk.bf16.vlgmr.msra.gmra.mxu2 %vm176_vm0, %v662_v30  ;;  %594 = vmatmul.msk.bf16.vlgmr.msra.gmra.mxu3 %vm176_vm0, %v663_v31 }
  0xa1   :  { %v198_v32 = vpop.f32.mrf.mxu0  ;;  %v203_v33 = vpop.f32.mrf.mxu1 }
  0xa2   :  { %219 = vst.msk [vmem:[#allocation2] sm:$0xff] %vm218_vm1, %v198_v32 }
  0xa3   :  { %221 = vst.msk [vmem:[#allocation2 + $0x10] sm:$0xff] %vm218_vm1, %v203_v33 }
  0xa8   :  { %v208_v34 = vpop.f32.mrf.mxu2  ;;  %v213_v35 = vpop.f32.mrf.mxu3 }
  0xa9   :  { %223 = vst.msk [vmem:[#allocation2 + $0x20] sm:$0xff] %vm218_vm1, %v208_v34  ;;  %v200_v36 = vpop.f32.mrf.mxu0  ;;  %v205_v37 = vpop.f32.mrf.mxu1 }
  0xaa   :  { %225 = vst.msk [vmem:[#allocation2 + $0x30] sm:$0xff] %vm218_vm1, %v213_v35 }
  0xab   :  { %220 = vst.msk [vmem:[#allocation2 + $0x8] sm:$0xff] %vm218_vm1, %v200_v36 }
  0xac   :  { %222 = vst.msk [vmem:[#allocation2 + $0x18] sm:$0xff] %vm218_vm1, %v205_v37 }
  0xb0   :  { %v210_v38 = vpop.f32.mrf.mxu2  ;;  %v215_v39 = vpop.f32.mrf.mxu3 }
  0xb1   :  { %224 = vst.msk [vmem:[#allocation2 + $0x28] sm:$0xff] %vm218_vm1, %v210_v38 }
  0xb2   :  { %226 = vst.msk [vmem:[#allocation2 + $0x38] sm:$0xff] %vm218_vm1, %v215_v39 }
  0xb3 LB: > { %v604_v41 = vor.u32 %v1000_v3, %v995_v2  ;;  %v632_v42 = vor.u32 %v1034_v17, %v1032_v16  ;;  %v600_v43 = vor.u32 %v990_v1, %v985_v0  ;;  %v628_v44 = vor.u32 %v1030_v15, %v1028_v14  ;;  %s893_s2 = smov 96   ;;  %s894_s14 = smov 64   ;;  %s885_s0 = sphi %s1096_s0, %s235_s0   ;;  %v881_v24 = vphi %v227_v24, %v1208_v24   ;;  %v877_v25 = vphi %v595_v25, %v1207_v25   ;;  %v873_v40 = vphi %v1090_v40, %v349_v40  }
  0xb4   : > { %v355_v45 = vpack.c.bf16 %v873_v40, %v873_v40  ;;  %v623_v46 = vor.u32 %v1026_v13, %v1024_v12  ;;  %v619_v47 = vor.u32 %v1022_v11, %v1020_v10  ;;  %v244_v48 = vpack.c.bf16 %v881_v24, %v881_v24  ;;  %s895_s15 = smov 32   ;;  %p239_p0 = scmp.lt.s32.totalorder %s885_s0, 7 }
  0xb5   : > { %269 = vmatpush.bf16.msra.mxu0 %v604_v41  ;;  %412 = vmatpush.bf16.msra.mxu3 %v632_v42  ;;  %v387_v49 = vpack.c.bf16 %v877_v25, %v877_v25  ;;  %v475_v50 = vperm.slane %v1052_v23, 0  ;;  %v246_v56 = vperm.slane %v1005_v4, 0  ;;  %v614_v29 = vor.u32 %v1013_v8, %v1011_v7  ;;  %s1164_s19 = sadd.s32 4294967295, %s885_s0  ;;  %p350_p4 = scmp.lt.s32.totalorder %s885_s0, 8 }
  0xb6   : > { %357 = vrot.lane.b32.xlu0 %v355_v45, %s893_s2  ;;  %380 = vmatpush.bf16.msra.mxu2 %v623_v46  ;;  %s240_s16 = scalar_select %p239_p0, %s885_s0, 7  ;;  %v610_v35 = vor.u32 %v1009_v6, %v1007_v5  ;;  %v642_v39 = vor.u32 %v1047_v22, %v1045_v21  ;;  %v638_v40 = vor.u32 %v1043_v20, %v1041_v19  ;;  %v389_v41 = vperm.slane %v1039_v18, 0 }
  0xb7   : > { %476 = vrot.lane.b32.xlu2 %v475_v50, %s894_s14  ;;  %319 = vmatpush.bf16.msra.mxu1 %v614_v29  ;;  %p494_p1 = scmp.ge.s32.totalorder %s1164_s19, 0  ;;  %p495_p2 = scmp.lt.s32.totalorder %s1164_s19, 8 }
  0xb8   : > { %s596_s17 = sshll.u32 %s240_s16, 3  ;;  %p646_p5 = scmp.lt.s32.totalorder %s885_s0, 1 }
  0xb9   : > { %270 = vmatpush.bf16.msra.mxu0 %v600_v43  ;;  %413 = vmatpush.bf16.msra.mxu3 %v628_v44  ;;  %s242_s18 = scalar_lea.vmem [#allocation2], %s596_s17  ;;  %p496_p3 = pnand %p495_p2, %p494_p1 }
  0xba   : > { %381 = vmatpush.bf16.msra.mxu2 %v619_v47  ;;  %v1135_v58 = vld [vmem:[%s242_s18] sm:$0xff]  ;;  %s351_s3 = scalar_select %p350_p4, 1, 0 }
  0xbb   : > { %320 = vmatpush.bf16.msra.mxu1 %v610_v35  ;;  %s645_s20 = scalar_select %p496_p3, 0, 1 }
  0xbc   : > { %605 = vmatmul.msk.bf16.vlgmr.msra.gmra.mxu0 %vm176_vm0, %v244_v48  ;;  %633 = vmatmul.msk.bf16.vlgmr.msra.gmra.mxu3 %vm176_vm0, %v387_v49  ;;  %s896_s4 = smov (!%p646_p5), 96   ;;  %s647_s6 = sshll.u32 (!%p646_p5), %s1164_s19, 3 }
  0xbd   : > { %462 = vmatpush.bf16.msrb.mxu0 %v642_v39  ;;  %s511_s7 = scalar_lea.vmem (!%p646_p5), %s1205_s12, %s647_s6 }
  0xbf   : > { %340 = vrot.lane.b32.xlu2 %v881_v24, %s895_s15 }
  0xc1   : > { %463 = vmatpush.bf16.msrb.mxu0 %v638_v40  ;;  %v499_v40 = vstv %s645_s20 }
  0xc2   : > { %vm500_vm10 = vcmp.eq.s32.totalorder %v499_v40, 1 }
 0x128   : > { %v358_v51 = vpop.permute.xlu0 %357 }
 0x129   : > { %624 = vmatmul.msk.bf16.vlgmr.msra.gmra.mxu2 %vm176_vm0, %v358_v51 }
 0x139   : > { %v272_v52 = vpop.f32.mrf.mxu0 }
 0x13a   : > { %v273_v57 = vadd.f32 %v272_v52, %v246_v56 }
 0x13c   : > { %v276_v59 = vadd.f32 %v273_v57, %v1135_v58 }
 0x13e   : > { %v606_v60 = vmul.f32 -1.442695, %v276_v59 }
 0x13f   : > { %v415_v53 = vpop.f32.mrf.mxu3 }
 0x140   : > { %715 = vpow2.f32 %v606_v60  ;;  %v416_v42 = vadd.f32 %v415_v53, %v389_v41 }
 0x141   : > { %v274_v54 = vpop.f32.mrf.mxu0 }
 0x146   : > { %v716_v61 = vpop.eup %715 }
 0x147   : > { %v417_v55 = vpop.f32.mrf.mxu3  ;;  %v280_v62 = vadd.f32 1.0, %v716_v61 }
 0x149   : > { %717 = vrcp.f32 %v280_v62  ;;  %v292_v30 = vand.u32 2147483648, %v280_v62  ;;  %vm286_vm2 = vweird.f32 %v280_v62  ;;  %v290_v32 = vand.u32 2147483647, %v280_v62 }
 0x14b   : > { %v293_v33 = vor.u32 1.1754944e-38, %v292_v30  ;;  %vm291_vm5 = vcmp.eq.f32.partialorder %v290_v32, 8.507059e+37  ;;  %v477_v30 = vpop.permute.xlu2 %476 }
 0x14f   : > { %v718_v63 = vpop.eup %717 }
 0x150   : > { %v282_v26 = vmul.f32 %v718_v63, %v280_v62  ;;  %vm287_vm3 = vweird.f32 %v718_v63 }
 0x151   : > { %vm288_vm4 = vmor %vm286_vm2, %vm287_vm3 }
 0x152   : > { %v283_v27 = vsub.f32 1.0, %v282_v26  ;;  %v332_v26 = vperm.slane %v1018_v9, 0 }
 0x154   : > { %v284_v28 = vmul.f32 %v718_v63, %v283_v27 }
 0x156   : > { %v285_v31 = vadd.f32 %v718_v63, %v284_v28 }
 0x158   : > { %v289_v34 = vsel %vm288_vm4, %v718_v63, %v285_v31 }
 0x159   : > { %v1142_v36 = vsel %vm291_vm5, %v293_v33, %v289_v34 }
 0x15a   : > { %v296_v37 = vmul.f32 %v881_v24, %v1142_v36 }
 0x15c   : > { %v297_v38 = vpack.c.bf16 %v296_v37, %v296_v37 }
 0x15e   : > { %615 = vmatmul.msk.bf16.vlgmr.msra.gmra.mxu1 %vm176_vm0, %v297_v38 }
 0x1ac   : > { %v383_v43 = vpop.f32.mrf.mxu2 }
 0x1ad   : > { %v419_v44 = vadd.f32 %v416_v42, %v383_v43 }
 0x1af   : > { %v634_v45 = vmul.f32 -1.442695, %v419_v44 }
 0x1b1   : > { %719 = vpow2.f32 %v634_v45 }
 0x1b4   : > { %v385_v24 = vpop.f32.mrf.mxu2 }
 0x1b5   : > { %v338_v24 = vsub.f32 1.0, %v1142_v36 }
 0x1b7   : > { %v720_v46 = vpop.eup %719 }
 0x1b8   : > { %v423_v47 = vadd.f32 1.0, %v720_v46  ;;  %v352_v46 = vstv %s351_s3 }
 0x1b9   : > { %vm353_vm11 = vcmp.eq.s32.totalorder %v352_v46, 1 }
 0x1ba   : > { %721 = vrcp.f32 %v423_v47  ;;  %v435_v51 = vand.u32 2147483648, %v423_v47  ;;  %v433_v54 = vand.u32 2147483647, %v423_v47  ;;  %vm429_vm7 = vweird.f32 %v423_v47 }
 0x1bc   : > { %v436_v56 = vor.u32 1.1754944e-38, %v435_v51  ;;  %vm434_vm9 = vcmp.eq.f32.partialorder %v433_v54, 8.507059e+37 }
 0x1c0   : > { %v722_v48 = vpop.eup %721 }
 0x1c1   : > { %v425_v49 = vmul.f32 %v722_v48, %v423_v47  ;;  %vm430_vm6 = vweird.f32 %v722_v48 }
 0x1c2   : > { %vm431_vm8 = vmor %vm429_vm7, %vm430_vm6 }
 0x1c3   : > { %v426_v50 = vsub.f32 1.0, %v425_v49 }
 0x1c5   : > { %v427_v52 = vmul.f32 %v722_v48, %v426_v50 }
 0x1c7   : > { %v428_v55 = vadd.f32 %v722_v48, %v427_v52 }
 0x1c9   : > { %v432_v53 = vsel %vm431_vm8, %v722_v48, %v428_v55 }
 0x1ca   : > { %v437_v57 = vsel %vm434_vm9, %v436_v56, %v432_v53 }
 0x1cb   : > { %v439_v59 = vmul.f32 %v877_v25, %v437_v57  ;;  %v481_v39 = vsub.f32 1.0, %v437_v57 }
 0x1cd   : > { %v440_v60 = vpack.c.bf16 %v439_v59, %v439_v59 }
 0x1cf   : > { %643 = vmatmul.msk.bf16.vlgmr.msrb.gmra.mxu0 %vm176_vm0, %v440_v60 }
 0x1db   : > { %v322_v61 = vpop.f32.mrf.mxu1 }
 0x1dc   : > { %327 = vrot.lane.b32.xlu0 %v322_v61, %s894_s14 }
 0x1e3   : > { %v324_v62 = vpop.f32.mrf.mxu1 }
 0x24c   : > { %v465_v63 = vpop.f32.mrf.mxu0 }
 0x24d   : > { %470 = vrot.lane.b32.xlu1 %v465_v63, %s894_s14 }
 0x24e   : > { %v328_v32 = vpop.permute.xlu0 %327 }
 0x24f   : > { %v330_v33 = vadd.f32 %v328_v32, %v1135_v58 }
 0x254   : > { %v467_v27 = vpop.f32.mrf.mxu0 }
 0x255   : > { %333 = vrot.lane.b32.xlu1 %v332_v26, %s894_s14 }
 0x25d   : > { %483 = vrot.lane.b32.xlu1 %v877_v25, %s895_s15  ;;  %v341_v25 = vpop.permute.xlu2 %340 }
 0x25e   : > { %v343_v48 = vmul.f32 %v341_v25, %v338_v24 }
 0x2bf   : > { %v471_v28 = vpop.permute.xlu1 %470 }
 0x2c0   : > { %v473_v29 = vadd.f32 %v471_v28, %v383_v43 }
 0x2c2   : > { %v479_v31 = vadd.f32 %v477_v30, %v473_v29 }
 0x2c4   : > { %723 = vtanh.f32 %v479_v31 }
 0x2c7   : > { %v334_v34 = vpop.permute.xlu1 %333 }
 0x2c8   : > { %v336_v35 = vadd.f32 %v334_v34, %v330_v33 }
 0x2ca   : > { %v724_v37 = vpop.eup %723  ;;  %725 = vtanh.f32 %v336_v35 }
 0x2cb   : > { %488 = vrot.lane.b32.xlu2 %v724_v37, %s893_s2 }
 0x2cf   : > { %v484_v58 = vpop.permute.xlu1 %483 }
 0x2d0   : > { %v726_v38 = vpop.eup %725  ;;  %v486_v42 = vmul.f32 %v484_v58, %v481_v39 }
 0x2d1   : > { %345 = vrot.lane.b32.xlu0 %v726_v38, %s893_s2 }
 0x325   : > { %v489_v41 = vpop.permute.xlu2 %488 }
 0x326   : > { %v491_v43 = vmul.f32 %v489_v41, %v437_v57 }
 0x328   : > { %v492_v44 = vadd.f32 %v491_v43, %v486_v42 }
 0x32a   : > { %v501_v45 = vsel %vm500_vm10, %v492_v44, %v484_v58 }
 0x343   : > { %v346_v47 = vpop.permute.xlu0 %345 }
 0x344   : > { %v348_v49 = vmul.f32 %v346_v47, %v1142_v36  ;;  %505 = sbr.rel (%p646_p5) target bundleno = 957 (0x3bd), region = 76 }
 0x346   : > { %v349_v40 = vadd.f32 %v348_v49, %v343_v48  }
 0x348   : > { %v354_v50 = vsel %vm353_vm11, %v349_v40, %v341_v25 }
 0x349   : > { %508 = vrot.lane.b32.xlu0 %v492_v44, %s896_s4 }
 0x3bb   : > { %v509_v51 = vpop.permute.xlu0 %508 }
 0x3bc   : > { %512 = vst.msk [vmem:[%s511_s7] sm:$0xff] %vm176_vm0, %v509_v51 }
 0x3bd PF: > { %514 = vrot.lane.b32.xlu0 %v354_v50, %s893_s2  ;;  %s235_s0 = sadd.s32 1, %s885_s0  }
 0x3be   : > { %p232_p6 = scmp.ge.s32.totalorder %s235_s0, 9  }
 0x3bf   :  { %s532_s24 = sshll.u32 (%p232_p6), %s1206_s13, 4  ;;  %s897_s25 = smov (%p232_p6), [#allocation11]   ;;  %s533_s24 = int_to_ptr.hbm [resolvable:$true] %s532_s24 }
 0x3c0   :  { %s530_s26 = sshll.u32 (%p232_p6), %s897_s25, 4  ;;  %s898_s5 = smov (%p232_p6), 128   ;;  %s531_s26 = int_to_ptr.vmem [resolvable:$true] %s530_s26 }
 0x3c1   :  { %s899_s11 = smov (%p232_p6), 8  }
 0x3c5   : > { %518 = vrot.lane.b32.xlu0 %v501_v45, %s893_s2 }
 0x42f   : > { %v515_v36 = vpop.permute.xlu0 %514  }
 0x430   : > { %v1208_v24 = vmov %v515_v36  ;;  %521 = vst.msk [vmem:[#allocation11] sm:$0xff] (%p232_p6), %vm176_vm0, %v515_v36 }
 0x434   :  { %234 = sbr.rel (!%p232_p6) target bundleno = 179 (0xb3), region = 107 }
 0x437   : > { %v519_v52 = vpop.permute.xlu0 %518  }
 0x438   : > { %v1207_v25 = vmov %v519_v52  ;;  %523 = vst.msk [vmem:[#allocation11 + $0x8] sm:$0xff] (%p232_p6), %vm176_vm0, %v519_v52 }
 0x439   :  { %538 = dma.vmem_to_hbm [thread:$0]  %s531_s26, 256, %s533_s24, [#allocation5], %s898_s5, %s898_s5, %s899_s11  }
 0x43a   :  { %869 = dma.done.wait [#allocation5], 256  }
 0x43b   :  { %870 = vsyncadd [#allocation5], 4294967040 }
 0x43c   :  { %545 = vsyncpa [#allocation4], 1 }
 0x43d   :  { %546 = vsyncpa [#allocation7], 1 }
 0x43e   :  { %547 = vsyncpa [#allocation10], 1 }
 0x43f   :  { %548 = vsyncpa [#allocation5], 1 }

</bundles_post_ra>
